<compile_context>
chip_gen: v5e
topology: v5e:2x2
jax: 0.10.0
libtpu: 0.0.40
codegen_flags: <defaults>
</compile_context>

<pallas_src>
import functools

import jax
import jax.numpy as jnp
from jax import lax
from jax.experimental import pallas as pl
from jax.experimental.pallas import tpu as pltpu

_MIB = 1024 * 1024


def _round_up(x, m):
    return ((x + m - 1) // m) * m


def _vmem_budget_bytes():
    """Generation-aware budget for the streamed tiles + total VMEM capacity."""
    cap = 64 * _MIB  # conservative fallback (v7x per-TC physical VMEM)
    try:
        info_cap = pltpu.get_tpu_info().vmem_capacity_bytes
        if isinstance(info_cap, (int, float)) and info_cap > 0:
            cap = int(info_cap)
    except Exception:
        pass
    # ~45% of physical VMEM for the double-buffered streamed tiles:
    # ~28 MiB on v7x (64 MiB/TC), capped at 48 MiB on v5e/v6e (128 MiB).
    return min(int(cap * 0.45), 48 * _MIB), cap


def _choose_tile_m(m_eff, d_eff, out_per_m, x_itemsize, budget):
    """Largest TM (multiple of 128, <= 16384) whose double-buffered x/out tiles
    fit `budget`, accounting for lane padding of the x rows in VMEM."""
    x_per_m = _round_up(d_eff, 128) * x_itemsize      # lane-padded x row
    per_m = 2 * (x_per_m + out_per_m)                 # 2 = double buffering
    tm = budget // max(per_m, 1)
    tm = max(128, min(16384, (tm // 128) * 128))
    return min(tm, _round_up(m_eff, 128))


def _linear_kernel(x_ref, w_ref, b_ref, o_ref, *, out_transposed):
    # x_ref: (TM, D_eff)   w_ref: (rows, D_eff)   b_ref: (rows, 1) or (1, C)
    x = x_ref[...]
    w = w_ref[...]
    if out_transposed:
        # NT matmul -> (rows, TM): lane-dense in M, no in-kernel weight transpose.
        y = lax.dot_general(w, x, dimension_numbers=(((1,), (1,)), ((), ())),
                            preferred_element_type=jnp.float32)
    else:
        # NT matmul -> (TM, C): lane-dense in C (used when C >= 128).
        y = lax.dot_general(x, w, dimension_numbers=(((1,), (1,)), ((), ())),
                            preferred_element_type=jnp.float32)
    o_ref[...] = (y + b_ref[...]).astype(o_ref.dtype)


def confidence_predictor(embeddings, weight, bias):
    """embeddings: (..., D); weight: (C, D); bias: (C,).
    Equivalent to nn.Linear(D, C)(embeddings).squeeze(-1)."""
    orig_shape = embeddings.shape
    D = orig_shape[-1]
    C = weight.shape[0]
    x_dtype = embeddings.dtype
    # TODO(synk): confirm desired output dtype when embeddings are bf16/fp8
    # (accumulation is f32; we cast back to the input dtype here).
    out_dtype = embeddings.dtype

    x2d = embeddings.reshape(-1, D)
    M = x2d.shape[0]
    x_itemsize = jnp.dtype(x_dtype).itemsize
    out_itemsize = jnp.dtype(out_dtype).itemsize

    # Output layout: lane-dense-in-M "(rows, TM)" tiles unless the class dim is
    # already lane-sized, in which case emit (TM, C) directly (skips transpose).
    out_transposed = C < 128

    # Lane packing: fold P = 128 // D rows into one 128-lane row (free reshape).
    P = 1
    if out_transposed and D < 128 and 128 % D == 0 and M % (128 // D) == 0:
        P = 128 // D

    if P > 1:
        x_in = x2d.reshape(M // P, P * D)                       # (M/P, 128)
        w_in = jnp.kron(jnp.eye(P, dtype=weight.dtype), weight).astype(x_dtype)
        b_in = jnp.tile(bias, P).reshape(P * C, 1).astype(jnp.float32)
    else:
        x_in = x2d
        w_in = weight.astype(x_dtype)
        b_in = (bias.reshape(C, 1) if out_transposed
                else bias.reshape(1, C)).astype(jnp.float32)

    m_eff, d_eff = x_in.shape
    rows_out = w_in.shape[0]                                    # P * C

    budget, vmem_cap = _vmem_budget_bytes()
    if out_transposed:
        # out tile (rows_out, TM): sublane-padded rows, TM lanes.
        out_per_m = _round_up(rows_out, 32 // out_itemsize) * out_itemsize
    else:
        # out tile (TM, C): lane-padded class dim.
        out_per_m = _round_up(C, 128) * out_itemsize
    tm = _choose_tile_m(m_eff, d_eff, out_per_m, x_itemsize, budget)
    grid = (pl.cdiv(m_eff, tm),)                                # no row padding

    # Footprint-consistent VMEM limit (with margin), clamped below capacity.
    lane_d = _round_up(d_eff, 128)
    w_itemsize = jnp.dtype(w_in.dtype).itemsize
    footprint = (2 * tm * lane_d * x_itemsize
                 + 2 * tm * out_per_m
                 + 2 * _round_up(rows_out, 32 // w_itemsize) * lane_d * w_itemsize
                 + 2 * _round_up(b_in.shape[0], 8) * 128 * 4)
    vmem_limit = int(min(0.9 * vmem_cap,
                         max(32 * _MIB, footprint * 5 // 4 + 4 * _MIB)))

    cost = pl.CostEstimate(
        flops=2 * M * D * C,
        transcendentals=0,
        bytes_accessed=(x_itemsize * M * D
                        + w_itemsize * rows_out * d_eff
                        + out_itemsize * M * C),
    )

    if out_transposed:
        out_shape = jax.ShapeDtypeStruct((rows_out, m_eff), out_dtype)
        out_spec = pl.BlockSpec((rows_out, tm), lambda i: (0, i))
    else:
        out_shape = jax.ShapeDtypeStruct((m_eff, C), out_dtype)
        out_spec = pl.BlockSpec((tm, C), lambda i: (i, 0))

    kernel = functools.partial(_linear_kernel, out_transposed=out_transposed)

    out = pl.pallas_call(
        kernel,
        out_shape=out_shape,
        grid_spec=pltpu.PrefetchScalarGridSpec(
            num_scalar_prefetch=0,
            grid=grid,
            in_specs=[
                pl.BlockSpec((tm, d_eff), lambda i: (i, 0)),        # stream M
                pl.BlockSpec((rows_out, d_eff), lambda i: (0, 0)),  # resident W
                pl.BlockSpec(tuple(b_in.shape), lambda i: (0, 0)),  # resident b
            ],
            out_specs=out_spec,
        ),
        compiler_params=pltpu.CompilerParams(
            dimension_semantics=("parallel",),      # megacore sharding on v7x
            vmem_limit_bytes=vmem_limit,
        ),
        cost_estimate=cost,
    )(x_in, w_in, b_in)

    if out_transposed:
        # (P*C, M/P): row j*C + c, col i holds class c of original row i*P + j.
        out2d = out.reshape(P, C, m_eff).transpose(2, 0, 1).reshape(M, C)
    else:
        out2d = out                                             # already (M, C)

    if C == 1:
        # torch .squeeze(-1) drops the size-1 class dim.
        return out2d[:, 0].reshape(orig_shape[:-1])
    return out2d.reshape(orig_shape[:-1] + (C,))


if __name__ == "__main__":
    # args.num_classes = 1, embedding_dim = 32 (small synthetic config)
    num_classes = 1
    embedding_dim = 32
    batch, seq = 2, 8

    key = jax.random.PRNGKey(0)
    k_x, k_w, k_b = jax.random.split(key, 3)

    embeddings = jax.random.normal(k_x, (batch, seq, embedding_dim),
                                   dtype=jnp.float32)
    # Deterministic "init" mimicking nn.Linear's kaiming-uniform-ish range.
    bound = 1.0 / (embedding_dim ** 0.5)
    weight = jax.random.uniform(k_w, (num_classes, embedding_dim),
                                minval=-bound, maxval=bound, dtype=jnp.float32)
    bias = jax.random.uniform(k_b, (num_classes,),
                              minval=-bound, maxval=bound, dtype=jnp.float32)

    out = confidence_predictor(embeddings, weight, bias)
    out = jax.block_until_ready(out)

    # Cross-check against plain JAX reference.
    ref = embeddings @ weight.T + bias
    if num_classes == 1:
        ref = ref[..., 0]
    assert out.shape == ref.shape, (out.shape, ref.shape)
    assert jnp.allclose(out, ref, atol=1e-5, rtol=1e-5)

    print("KERNEL_OK")
</pallas_src>

<mosaic_0001>
module attributes {stable_mosaic.version = 11 : i64} {
  func.func @_linear_kernel(%arg0: i32, %arg1: memref<128x128xf32, #tpu.memory_space<vmem>>, %arg2: memref<4x128xf32, #tpu.memory_space<vmem>>, %arg3: memref<4x1xf32, #tpu.memory_space<vmem>>, %arg4: memref<4x128xf32, #tpu.memory_space<vmem>>) attributes {dimension_semantics = [#tpu.dimension_semantics<parallel>], iteration_bounds = array<i64: 1>, scalar_prefetch = 0 : i64, scratch_operands = 0 : i64, tpu.core_type = #tpu.core_type<tc>, window_params = [{transform_indices = @transform_0, window_bounds = array<i64: 128, 128>}, {pipeline_mode = #tpu.pipeline_mode<synchronous>, transform_indices = @transform_1, window_bounds = array<i64: 4, 128>}, {pipeline_mode = #tpu.pipeline_mode<synchronous>, transform_indices = @transform_2, window_bounds = array<i64: 4, 1>}, {transform_indices = @transform_3, window_bounds = array<i64: 4, 128>}]} {
    %c0 = arith.constant 0 : index
    %c0_0 = arith.constant 0 : index
    %0 = vector.load %arg1[%c0, %c0_0] : memref<128x128xf32, #tpu.memory_space<vmem>>, vector<128x128xf32>
    %c0_1 = arith.constant 0 : index
    %c0_2 = arith.constant 0 : index
    %1 = vector.load %arg2[%c0_1, %c0_2] : memref<4x128xf32, #tpu.memory_space<vmem>>, vector<4x128xf32>
    %cst = arith.constant dense<0.000000e+00> : vector<4x128xf32>
    %2 = tpu.matmul %1, %0, %cst {dimension_numbers = #tpu.dot_dimension_numbers<[1], [1], [0], [0], [0, 0, 1, 0], [], []>} : vector<4x128xf32>, vector<128x128xf32>, vector<4x128xf32> -> vector<4x128xf32>
    %c0_3 = arith.constant 0 : index
    %c0_4 = arith.constant 0 : index
    %3 = vector.load %arg3[%c0_3, %c0_4] : memref<4x1xf32, #tpu.memory_space<vmem>>, vector<4x1xf32>
    %4 = vector.broadcast %3 : vector<4x1xf32> to vector<4x128xf32>
    %5 = arith.addf %2, %4 : vector<4x128xf32>
    %c0_5 = arith.constant 0 : index
    %c0_6 = arith.constant 0 : index
    %6 = vector.load %arg4[%c0_5, %c0_6] : memref<4x128xf32, #tpu.memory_space<vmem>>, vector<4x128xf32>
    tpu.vector_store %arg4[%c0_5, %c0_6], %5 {strides = array<i32>} : memref<4x128xf32, #tpu.memory_space<vmem>>, vector<4x128xf32>,
    return
  }
  func.func @transform_0(%arg0: i32) -> (i32, i32) {
    %c0_i32 = arith.constant 0 : i32
    %c0_i32_0 = arith.constant 0 : i32
    return %arg0, %c0_i32 : i32, i32
  }
  func.func @transform_1(%arg0: i32) -> (i32, i32) {
    %c0_i32 = arith.constant 0 : i32
    %c0_i32_0 = arith.constant 0 : i32
    %c0_i32_1 = arith.constant 0 : i32
    return %c0_i32, %c0_i32_0 : i32, i32
  }
  func.func @transform_2(%arg0: i32) -> (i32, i32) {
    %c0_i32 = arith.constant 0 : i32
    %c0_i32_0 = arith.constant 0 : i32
    %c0_i32_1 = arith.constant 0 : i32
    return %c0_i32, %c0_i32_0 : i32, i32
  }
  func.func @transform_3(%arg0: i32) -> (i32, i32) {
    %c0_i32 = arith.constant 0 : i32
    %c0_i32_0 = arith.constant 0 : i32
    return %c0_i32, %arg0 : i32, i32
  }
}

</mosaic_0001>

<bundles_post_ra>
// kernel: tpu_custom_call.1
= control target key start
LH: loop header
LB: loop body
LE: loop exit
PB: predicated region body
PF: predicated region fallthrough
CT: control target
= control target key end

     0   :  { %8 = vsyncpa [#allocation3], 0  ;;  %s226_s0 = inlined_call_operand.vmem [shape: f32[4,128], index: 0, kind: input, shape index: {}]   ;;  %s227_s1 = inlined_call_operand.hbm [shape: f32[4,128], index: 1, kind: input, shape index: {}]   ;;  %s228_s2 = inlined_call_operand.vmem [shape: f32[4,1], index: 2, kind: input, shape index: {}]   ;;  %s229_s3 = inlined_call_operand.hbm [shape: f32[4,4], index: 3, kind: output, shape index: {}]  }
   0x1   :  { %9 = vsyncpa [#allocation4], 0  ;;  %s17_s14 = sshll.u32 %s227_s1, 4  ;;  %s146_s15 = smov [#allocation2]   ;;  %s18_s14 = int_to_ptr.hbm [resolvable:$true] %s17_s14 }
   0x2   :  { %s19_s16 = sshll.u32 %s146_s15, 4  ;;  %s20_s16 = int_to_ptr.vmem [resolvable:$true] %s19_s16 }
   0x3   :  { %22 = dma.hbm_to_vmem [thread:$0]  %s18_s14, 64, %s20_s16, [#allocation3]  }
   0x4   :  { %142 = dma.done.wait [#allocation3], 64  }
   0x5   :  { %143 = vsyncadd [#allocation3], 4294967232  ;;  %v44_v0 = vld [vmem:[%s226_s0 + $0x78] sm:$0xff]  ;;  %v43_v1 = vld [vmem:[%s226_s0 + $0x70] sm:$0xff]  ;;  %v147_v10 = vmov 0   ;;  %s148_s22 = smov [#allocation5]  }
   0x6   :  { %52 = vmatpush.xpose.msra.mxu0 %v44_v0  ;;  %v42_v2 = vld [vmem:[%s226_s0 + $0x68] sm:$0xff]  ;;  %v41_v3 = vld [vmem:[%s226_s0 + $0x60] sm:$0xff]  ;;  %v40_v4 = vld [vmem:[%s226_s0 + $0x58] sm:$0xff]  ;;  %93 = vset.pattern.permute.xlu0 %v147_v10  ;;  %s78_s1 = sshll.u32 %s148_s22, 4  ;;  %s80_s25 = sshll.u32 %s229_s3, 4  ;;  %s79_s1 = int_to_ptr.vmem [resolvable:$true] %s78_s1  ;;  %s81_s25 = int_to_ptr.hbm [resolvable:$true] %s80_s25 }
   0x7   :  { %v39_v5 = vld [vmem:[%s226_s0 + $0x50] sm:$0xff]  ;;  %v38_v6 = vld [vmem:[%s226_s0 + $0x48] sm:$0xff]  ;;  %v37_v7 = vld [vmem:[%s226_s0 + $0x40] sm:$0xff] }
   0x8   :  { %v36_v8 = vld [vmem:[%s226_s0 + $0x38] sm:$0xff]  ;;  %v46_v9 = vld [vmem:[%s228_s2] sm:$0xf]  ;;  %v35_v11 = vld [vmem:[%s226_s0 + $0x30] sm:$0xff] }
   0x9   :  { %49 = vperm.xlu0 %93, %v46_v9   ;;  %v34_v12 = vld [vmem:[%s226_s0 + $0x28] sm:$0xff]  ;;  %v33_v13 = vld [vmem:[%s226_s0 + $0x20] sm:$0xff]  ;;  %v32_v14 = vld [vmem:[%s226_s0 + $0x18] sm:$0xff] }
   0xa   :  { %53 = vmatpush.xpose.msra.mxu0 %v43_v1  ;;  %v31_v15 = vld [vmem:[%s226_s0 + $0x10] sm:$0xff]  ;;  %v30_v16 = vld [vmem:[%s226_s0 + $0x8] sm:$0xff]  ;;  %v29_v17 = vld [vmem:[%s226_s0] sm:$0xff] }
   0xb   :  { %v45_v18 = vld [vmem:[#allocation2] sm:$0xf] }
   0xe   :  { %54 = vmatpush.xpose.msra.mxu0 %v42_v2 }
  0x12   :  { %55 = vmatpush.xpose.msra.mxu0 %v41_v3 }
  0x16   :  { %56 = vmatpush.xpose.msra.mxu0 %v40_v4 }
  0x1a   :  { %57 = vmatpush.xpose.msra.mxu0 %v39_v5 }
  0x1e   :  { %58 = vmatpush.xpose.msra.mxu0 %v38_v6 }
  0x22   :  { %59 = vmatpush.xpose.msra.mxu0 %v37_v7 }
  0x26   :  { %60 = vmatpush.xpose.msra.mxu0 %v36_v8 }
  0x2a   :  { %61 = vmatpush.xpose.msra.mxu0 %v35_v11 }
  0x2e   :  { %62 = vmatpush.xpose.msra.mxu0 %v34_v12 }
  0x32   :  { %63 = vmatpush.xpose.msra.mxu0 %v33_v13 }
  0x36   :  { %64 = vmatpush.xpose.msra.mxu0 %v32_v14 }
  0x3a   :  { %65 = vmatpush.xpose.msra.mxu0 %v31_v15 }
  0x3e   :  { %66 = vmatpush.xpose.msra.mxu0 %v30_v16 }
  0x42   :  { %67 = vmatpush.xpose.msra.mxu0 %v29_v17 }
  0x45   :  { %68 = vmatmul.f32.vlgmr.msra.gmra.mxu0 %v45_v18 }
  0x7b   :  { %v50_v19 = vpop.permute.xlu0 %49 }
  0xc2   :  { %v69_v20 = vpop.f32.mrf.mxu0 }
  0xc3   :  { %v70_v21 = vadd.f32 %v69_v20, %v50_v19 }
  0xc5   :  { %72 = vst [vmem:[#allocation5] sm:$0xf] %v70_v21 }
  0xc6   :  { %83 = dma.vmem_to_hbm [thread:$0]  %s79_s1, 64, %s81_s25, [#allocation4]  }
  0xc7   :  { %144 = dma.done.wait [#allocation4], 64  }
  0xc8   :  { %145 = vsyncadd [#allocation4], 4294967232 }
  0xc9   :  { %88 = vsyncpa [#allocation3], 1 }
  0xca   :  { %89 = vsyncpa [#allocation4], 1 }

</bundles_post_ra>
